<compile_context>
chip_gen: v6e
topology: v6e:2x2x1
jax: 0.10.0
libtpu: 0.0.40
codegen_flags: <defaults>
</compile_context>

<pallas_src>
import math

import jax
import jax.numpy as jnp
from jax.experimental import pallas as pl
from jax.experimental.pallas import tpu as pltpu


# Per-block buffer byte budget.  Pallas double-buffers input and output, so the
# resident footprint is ~4x this (plus small internal scratch) -> ~16-17 MiB,
# comfortably inside the scoped VMEM limit below on every TPU generation.
_BLOCK_BYTES_BUDGET = 4 * 1024 * 1024
_VMEM_LIMIT_BYTES = 48 * 1024 * 1024  # < 64 MiB physical on v7x; plenty on v5e/v6e.

_LANE = 128
_SUBLANE = 8
_MAX_LANE_WIDTH = 2048  # elements in the lane (last) dim of a block row


def _copy_kernel(x_ref, o_ref):
    # Straight copy of the current block (pure data movement; zero compute).
    o_ref[...] = x_ref[...]


def _pick_lane_width(total: int) -> int:
    """Largest C (multiple of 128, <= _MAX_LANE_WIDTH) dividing `total`,
    preferring a C for which total // C is a multiple of 8 (sublane-dense)."""
    best = _LANE
    best_dense = None
    c = _LANE
    while c <= min(total, _MAX_LANE_WIDTH):
        if total % c == 0:
            best = c
            if (total // c) % _SUBLANE == 0:
                best_dense = c
        c += _LANE
    return best_dense if best_dense is not None else best


def _pick_row_tile(rows: int, row_bytes: int, budget: int) -> int:
    """Largest row-tile that divides `rows`, is a multiple of 8, and fits the
    byte budget.  Falls back to the full row count (always a legal block dim)."""
    if rows % _SUBLANE == 0:
        tr_max = (budget // max(row_bytes, 1)) // _SUBLANE * _SUBLANE
        tr_max = max(_SUBLANE, min(rows, tr_max))
        for cand in range(tr_max, _SUBLANE - 1, -_SUBLANE):
            if rows % cand == 0:
                return cand
        return _SUBLANE
    # rows not a multiple of 8: block dim equal to the full array dim is legal.
    return rows


def flattenlayer_forward(x: jax.Array) -> jax.Array:
    """Equivalent of `flattenlayer.forward`: returns x reshaped to (N, -1)."""
    n = x.shape[0]
    d = math.prod(x.shape[1:])
    total = n * d
    itemsize = jnp.dtype(x.dtype).itemsize

    compiler_params = pltpu.CompilerParams(
        dimension_semantics=("parallel",),
        vmem_limit_bytes=_VMEM_LIMIT_BYTES,
    )
    cost = pl.CostEstimate(
        flops=0, transcendentals=0, bytes_accessed=2 * total * itemsize
    )

    if total % _LANE == 0:
        # Lane/sublane-dense path: view the flat buffer as (R, C) with C a
        # multiple of 128 and (when possible) R a multiple of 8.
        c = _pick_lane_width(total)
        r = total // c
        x2 = x.reshape(r, c)  # metadata-only row-major collapse
        tr = _pick_row_tile(r, c * itemsize, _BLOCK_BYTES_BUDGET)
        grid = (r // tr,)

        out2 = pl.pallas_call(
            _copy_kernel,
            out_shape=jax.ShapeDtypeStruct((r, c), x.dtype),
            grid=grid,
            in_specs=[pl.BlockSpec((tr, c), lambda i: (i, 0))],
            out_specs=pl.BlockSpec((tr, c), lambda i: (i, 0)),
            compiler_params=compiler_params,
            cost_estimate=cost,
        )(x2)
        return out2.reshape(n, d)  # metadata-only

    # Unaligned flat size: tile over batch rows with the full flat dim as the
    # lane axis (full-dim block sizes are always legal).
    # TODO(synk): very large unaligned (n, d) with n not a multiple of 8 still
    # falls back to a single full block; pad d to a 128 multiple if that bites.
    x2 = x.reshape(n, d)
    tn = _pick_row_tile(n, d * itemsize, _BLOCK_BYTES_BUDGET)
    grid = (n // tn,)
    return pl.pallas_call(
        _copy_kernel,
        out_shape=jax.ShapeDtypeStruct((n, d), x.dtype),
        grid=grid,
        in_specs=[pl.BlockSpec((tn, d), lambda i: (i, 0))],
        out_specs=pl.BlockSpec((tn, d), lambda i: (i, 0)),
        compiler_params=compiler_params,
        cost_estimate=cost,
    )(x2)


if __name__ == "__main__":
    key = jax.random.PRNGKey(0)
    # Small NCHW input consistent with a conv-net feature map fed to flatten.
    x = jax.random.normal(key, (2, 4, 16, 16), dtype=jnp.float32)

    out = flattenlayer_forward(x)
    out = jax.block_until_ready(out)

    # Reference semantics: x.view(N, -1) == row-major reshape.
    ref = jnp.reshape(x, (x.shape[0], -1))

    assert out.shape == (2, 4 * 16 * 16), out.shape
    assert out.dtype == x.dtype
    assert bool(jnp.array_equal(out, ref)), "mismatch vs reference reshape"

    print("KERNEL_OK")
</pallas_src>

<mosaic_0001>
module attributes {stable_mosaic.version = 11 : i64} {
  func.func @_copy_kernel(%arg0: i32, %arg1: memref<8x256xf32, #tpu.memory_space<vmem>>, %arg2: memref<8x256xf32, #tpu.memory_space<vmem>>) attributes {dimension_semantics = [#tpu.dimension_semantics<parallel>], iteration_bounds = array<i64: 1>, scalar_prefetch = 0 : i64, scratch_operands = 0 : i64, tpu.core_type = #tpu.core_type<tc>, window_params = [{transform_indices = @transform_0, window_bounds = array<i64: 8, 256>}, {transform_indices = @transform_1, window_bounds = array<i64: 8, 256>}]} {
    %c0 = arith.constant 0 : index
    %c0_0 = arith.constant 0 : index
    %0 = vector.load %arg1[%c0, %c0_0] : memref<8x256xf32, #tpu.memory_space<vmem>>, vector<8x256xf32>
    %c0_1 = arith.constant 0 : index
    %c0_2 = arith.constant 0 : index
    %1 = vector.load %arg2[%c0_1, %c0_2] : memref<8x256xf32, #tpu.memory_space<vmem>>, vector<8x256xf32>
    tpu.vector_store %arg2[%c0_1, %c0_2], %0 {strides = array<i32>} : memref<8x256xf32, #tpu.memory_space<vmem>>, vector<8x256xf32>,
    return
  }
  func.func @transform_0(%arg0: i32) -> (i32, i32) {
    %c0_i32 = arith.constant 0 : i32
    %c0_i32_0 = arith.constant 0 : i32
    return %arg0, %c0_i32 : i32, i32
  }
  func.func @transform_1(%arg0: i32) -> (i32, i32) {
    %c0_i32 = arith.constant 0 : i32
    %c0_i32_0 = arith.constant 0 : i32
    return %arg0, %c0_i32 : i32, i32
  }
}

</mosaic_0001>

<bundles_post_ra>
// kernel: tpu_custom_call.1
= control target key start
LH: loop header
LB: loop body
LE: loop exit
PB: predicated region body
PF: predicated region fallthrough
CT: control target
= control target key end

     0   :  { %6 = vsyncpa [#allocation3], 0  ;;  %s104_s0 = inlined_call_operand.hbm [shape: f32[8,256], index: 0, kind: input, shape index: {}]   ;;  %s105_s1 = inlined_call_operand.hbm [shape: f32[8,256], index: 1, kind: output, shape index: {}]  }
   0x1   :  { %7 = vsyncpa [#allocation4], 0  ;;  %s86_s6 = smov [#allocation2]  }
   0x2   :  { %s14_s7 = sshll.u32 %s86_s6, 4  ;;  %s15_s7 = int_to_ptr.vmem [resolvable:$true] %s14_s7 }
   0x3   :  { %s50_s8 = scalar_lea.vmem %s15_s7, 256  ;;  %p55_p1 = scmp.lt.s32.totalorder %s15_s7, %s15_s7 }
   0x4   :  { %p51_p0 = scmp.ne.s32.totalorder %s15_s7, %s50_s8  ;;  %p56_p2 = scmp.lt.s32.totalorder %s50_s8, %s50_s8 }
   0x6   :  { %p57_p3 = por %p56_p2, %p55_p1 }
   0x8   :  { %p58_p4 = pnand %p57_p3, %p51_p0 }
   0xa   :  { %61 = shalt.err (!%p58_p4)
}
   0xb   :  { %17 = dma.hbm_to_vmem [thread:$0]  %s104_s0, 256, %s15_s7, [#allocation3]  }
   0xc   :  { %82 = dma.done.wait [#allocation3], 256  }
   0xd   :  { %83 = vsyncadd [#allocation3], 4294967040  ;;  %s87_s11 = smov [#allocation5]   ;;  %v21_v0 = vld [vmem:[#allocation2] sm:$0xff]  ;;  %v22_v1 = vld [vmem:[#allocation2 + $0x8] sm:$0xff] }
   0xe   :  { %s31_s12 = sshll.u32 %s87_s11, 4  ;;  %23 = vst [vmem:[#allocation5] sm:$0xff] %v21_v0  ;;  %24 = vst [vmem:[#allocation5 + $0x8] sm:$0xff] %v22_v1  ;;  %s32_s12 = int_to_ptr.vmem [resolvable:$true] %s31_s12 }
   0xf   :  { %s62_s13 = scalar_lea.vmem %s32_s12, 256  ;;  %p67_p6 = scmp.lt.s32.totalorder %s32_s12, %s32_s12 }
  0x10   :  { %p63_p5 = scmp.ne.s32.totalorder %s32_s12, %s62_s13  ;;  %p68_p7 = scmp.lt.s32.totalorder %s62_s13, %s62_s13 }
  0x12   :  { %p69_p8 = por %p68_p7, %p67_p6 }
  0x14   :  { %p70_p9 = pnand %p69_p8, %p63_p5 }
  0x16   :  { %73 = shalt.err (!%p70_p9)
}
  0x17   :  { %34 = dma.vmem_to_hbm [thread:$0]  %s32_s12, 256, %s105_s1, [#allocation4]  }
  0x18   :  { %84 = dma.done.wait [#allocation4], 256  }
  0x19   :  { %85 = vsyncadd [#allocation4], 4294967040 }
  0x1a   :  { %38 = vsyncpa [#allocation3], 1 }
  0x1b   :  { %39 = vsyncpa [#allocation4], 1 }

</bundles_post_ra>
